<compile_context>
chip_gen: v7x
topology: tpu7x:2x2x1
jax: 0.10.0
libtpu: 0.0.40
codegen_flags: <defaults>
</compile_context>

<pallas_src>
import jax
import jax.numpy as jnp
from jax.experimental import pallas as pl
from jax.experimental.pallas import tpu as pltpu


def _ffnn_kernel(x_ref, w1_ref, b1_ref, w2_ref, b2_ref, w3_ref, b3_ref, o_ref):
    # ---- Linear(input_dim, 64) with folded BatchNorm, then ReLU ----
    # bf16 operands, f32 accumulation.
    h1 = jnp.dot(x_ref[...], w1_ref[...], preferred_element_type=jnp.float32)
    h1 = jnp.maximum(h1 + b1_ref[...], 0.0)

    # ---- Linear(64, 32) + ReLU ----
    h2 = jnp.dot(h1.astype(jnp.bfloat16), w2_ref[...],
                 preferred_element_type=jnp.float32)
    h2 = jnp.maximum(h2 + b2_ref[...], 0.0)            # (TB, 32) f32

    # ---- Linear(32, 1) as a lane-dense row: (1,32) @ (32,TB) -> (1,TB) ----
    # h2.T goes through the XLU (has slack); the result lands with the batch
    # index on the lane axis, so the output store is dense.
    y = jnp.dot(w3_ref[...], h2.T, preferred_element_type=jnp.float32)
    y = y + b3_ref[...]                                 # (1, TB) f32
    o_ref[...] = y.reshape(o_ref.shape)                 # (1, 1, TB)


def _round_up(n, m):
    return ((n + m - 1) // m) * m


def feedforward_nn(x, params, *, block_b=4096):
    """x: [B, input_dim] float32. Returns [B, 1] float32."""
    (w1, b1, gamma, beta, rmean, rvar, w2, b2, w3, b3) = params
    B, D = x.shape
    assert block_b % 128 == 0

    # ---- Fold eval-mode BatchNorm1d(64) into the first Linear (f32 fold),
    #      then cast the streamed/matmul operands to bf16 ----
    eps = 1e-5
    scale = gamma * jax.lax.rsqrt(rvar + eps)            # (1, 64)
    w1f = (w1 * scale).astype(jnp.bfloat16)              # (D, 64) bf16
    b1f = (b1 - rmean) * scale + beta                    # (1, 64) f32
    w2b = w2.astype(jnp.bfloat16)                        # (64, 32) bf16
    w3r = w3.reshape(1, 32)                              # (1, 32) f32 (row form)
    xb = x.astype(jnp.bfloat16)

    # ---- Batch tiling (no wrapper-side padding) ----
    # Small batch: one exact block.  Mid batch: split into ~2 blocks so v7x's
    # two TensorCores both get work.  Large batch: block_b-sized tiles; the
    # ragged final block is handled by Pallas (garbage rows sliced off below).
    if B <= 1024:
        TB = _round_up(B, 8)
    elif B <= 2 * block_b:
        TB = min(block_b, _round_up(pl.cdiv(B, 2), 128))
    else:
        TB = block_b
    nblk = pl.cdiv(B, TB)
    grid = (nblk,)
    Bp = nblk * TB

    def const_spec(arr):
        return pl.BlockSpec(arr.shape, lambda i: (0, 0))

    in_specs = [
        pl.BlockSpec((TB, D), lambda i: (i, 0)),   # x: streamed per grid step
        const_spec(w1f), const_spec(b1f),          # params: VMEM-resident
        const_spec(w2b), const_spec(b2),
        const_spec(w3r), const_spec(b3),
    ]

    param_bytes = (D * 64 + 64 * 32) * 2 + (64 + 32 + 32 + 1) * 4
    cost = pl.CostEstimate(
        flops=2 * Bp * (D * 64 + 64 * 32 + 32),
        transcendentals=0,
        bytes_accessed=Bp * (2 * D + 4) + param_bytes,
    )

    out = pl.pallas_call(
        _ffnn_kernel,
        out_shape=jax.ShapeDtypeStruct((nblk, 1, TB), jnp.float32),
        grid=grid,
        in_specs=in_specs,
        out_specs=pl.BlockSpec((1, 1, TB), lambda i: (i, 0, 0)),
        compiler_params=pltpu.CompilerParams(
            dimension_semantics=("parallel",),
            vmem_limit_bytes=32 * 1024 * 1024,
        ),
        cost_estimate=cost,
    )(xb, w1f, b1f, w2b, b2, w3r, b3)

    # (nblk, 1, TB) flattens row-major to the global batch order.
    return out.reshape(Bp, 1)[:B]


def init_params(key, input_dim):
    """Deterministic synthetic parameters (PyTorch Linear layout is (out,in);
    we store the transposed (in,out) form used by the kernel)."""
    ks = jax.random.split(key, 10)

    def linear(kw, kb, fan_in, fan_out):
        bound = 1.0 / jnp.sqrt(fan_in)
        w = jax.random.uniform(kw, (fan_in, fan_out), jnp.float32, -bound, bound)
        b = jax.random.uniform(kb, (1, fan_out), jnp.float32, -bound, bound)
        return w, b

    w1, b1 = linear(ks[0], ks[1], input_dim, 64)
    w2, b2 = linear(ks[2], ks[3], 64, 32)
    w3, b3 = linear(ks[4], ks[5], 32, 1)

    # BatchNorm1d(64) running stats / affine params (non-trivial so the BN
    # folding path is actually exercised).
    gamma = 1.0 + 0.2 * jax.random.normal(ks[6], (1, 64), jnp.float32)
    beta = 0.1 * jax.random.normal(ks[7], (1, 64), jnp.float32)
    rmean = 0.1 * jax.random.normal(ks[8], (1, 64), jnp.float32)
    rvar = 1.0 + 0.1 * jax.random.uniform(ks[9], (1, 64), jnp.float32)

    return (w1, b1, gamma, beta, rmean, rvar, w2, b2, w3, b3)


def reference(x, params):
    (w1, b1, gamma, beta, rmean, rvar, w2, b2, w3, b3) = params
    h = x @ w1 + b1
    h = (h - rmean) * jax.lax.rsqrt(rvar + 1e-5) * gamma + beta
    h = jnp.maximum(h, 0.0)
    h = jnp.maximum(h @ w2 + b2, 0.0)
    return h @ w3 + b3


if __name__ == "__main__":
    key = jax.random.PRNGKey(0)
    k_x, k_p, k_x2 = jax.random.split(key, 3)

    batch, input_dim = 8, 16
    params = init_params(k_p, input_dim)

    # Small, exact-tile batch.
    x = jax.random.normal(k_x, (batch, input_dim), jnp.float32)
    out = jax.block_until_ready(feedforward_nn(x, params))
    ref = reference(x, params)
    assert out.shape == (batch, 1), out.shape
    assert jnp.allclose(out, ref, atol=5e-2, rtol=5e-2), "mismatch (small batch)"

    # Multi-block, ragged final block (exercises pipelining + lane-dense epilogue).
    b_big = 300
    x2 = jax.random.normal(k_x2, (b_big, input_dim), jnp.float32)
    out2 = jax.block_until_ready(feedforward_nn(x2, params, block_b=128))
    ref2 = reference(x2, params)
    assert out2.shape == (b_big, 1), out2.shape
    assert jnp.allclose(out2, ref2, atol=5e-2, rtol=5e-2), "mismatch (tiled batch)"

    print("KERNEL_OK")
</pallas_src>

<mosaic_0001>
module attributes {stable_mosaic.version = 11 : i64} {
  func.func @_ffnn_kernel(%arg0: i32, %arg1: memref<8x16xbf16, #tpu.memory_space<vmem>>, %arg2: memref<16x64xbf16, #tpu.memory_space<vmem>>, %arg3: memref<1x64xf32, #tpu.memory_space<vmem>>, %arg4: memref<64x32xbf16, #tpu.memory_space<vmem>>, %arg5: memref<1x32xf32, #tpu.memory_space<vmem>>, %arg6: memref<1x32xf32, #tpu.memory_space<vmem>>, %arg7: memref<1x1xf32, #tpu.memory_space<vmem>>, %arg8: memref<1x1x8xf32, #tpu.memory_space<vmem>>) attributes {dimension_semantics = [#tpu.dimension_semantics<parallel>], iteration_bounds = array<i64: 1>, scalar_prefetch = 0 : i64, scratch_operands = 0 : i64, tpu.core_type = #tpu.core_type<tc>, window_params = [{transform_indices = @transform_0, window_bounds = array<i64: 8, 16>}, {pipeline_mode = #tpu.pipeline_mode<synchronous>, transform_indices = @transform_1, window_bounds = array<i64: 16, 64>}, {pipeline_mode = #tpu.pipeline_mode<synchronous>, transform_indices = @transform_2, window_bounds = array<i64: 1, 64>}, {pipeline_mode = #tpu.pipeline_mode<synchronous>, transform_indices = @transform_3, window_bounds = array<i64: 64, 32>}, {pipeline_mode = #tpu.pipeline_mode<synchronous>, transform_indices = @transform_4, window_bounds = array<i64: 1, 32>}, {pipeline_mode = #tpu.pipeline_mode<synchronous>, transform_indices = @transform_5, window_bounds = array<i64: 1, 32>}, {pipeline_mode = #tpu.pipeline_mode<synchronous>, transform_indices = @transform_6, window_bounds = array<i64: 1, 1>}, {transform_indices = @transform_7, window_bounds = array<i64: 1, 1, 8>}]} {
    %c0 = arith.constant 0 : index
    %c0_0 = arith.constant 0 : index
    %0 = vector.load %arg1[%c0, %c0_0] : memref<8x16xbf16, #tpu.memory_space<vmem>>, vector<8x16xbf16>
    %c0_1 = arith.constant 0 : index
    %c0_2 = arith.constant 0 : index
    %1 = vector.load %arg2[%c0_1, %c0_2] : memref<16x64xbf16, #tpu.memory_space<vmem>>, vector<16x64xbf16>
    %cst = arith.constant dense<0.000000e+00> : vector<8x64xf32>
    %2 = tpu.matmul %0, %1, %cst {dimension_numbers = #tpu.dot_dimension_numbers<[1], [0], [0], [1], [0, 0, 1, 1], [], []>} : vector<8x16xbf16>, vector<16x64xbf16>, vector<8x64xf32> -> vector<8x64xf32>
    %c0_3 = arith.constant 0 : index
    %c0_4 = arith.constant 0 : index
    %3 = vector.load %arg3[%c0_3, %c0_4] : memref<1x64xf32, #tpu.memory_space<vmem>>, vector<1x64xf32>
    %4 = vector.broadcast %3 : vector<1x64xf32> to vector<8x64xf32>
    %5 = arith.addf %2, %4 : vector<8x64xf32>
    %cst_5 = arith.constant 0.000000e+00 : f32
    %6 = vector.broadcast %cst_5 : f32 to vector<8x64xf32>
    %7 = arith.maximumf %5, %6 : vector<8x64xf32>
    %8 = arith.truncf %7 : vector<8x64xf32> to vector<8x64xbf16>
    %c0_6 = arith.constant 0 : index
    %c0_7 = arith.constant 0 : index
    %9 = vector.load %arg4[%c0_6, %c0_7] : memref<64x32xbf16, #tpu.memory_space<vmem>>, vector<64x32xbf16>
    %cst_8 = arith.constant dense<0.000000e+00> : vector<8x32xf32>
    %10 = tpu.matmul %8, %9, %cst_8 {dimension_numbers = #tpu.dot_dimension_numbers<[1], [0], [0], [1], [0, 0, 1, 1], [], []>} : vector<8x64xbf16>, vector<64x32xbf16>, vector<8x32xf32> -> vector<8x32xf32>
    %c0_9 = arith.constant 0 : index
    %c0_10 = arith.constant 0 : index
    %11 = vector.load %arg5[%c0_9, %c0_10] : memref<1x32xf32, #tpu.memory_space<vmem>>, vector<1x32xf32>
    %12 = vector.broadcast %11 : vector<1x32xf32> to vector<8x32xf32>
    %13 = arith.addf %10, %12 : vector<8x32xf32>
    %cst_11 = arith.constant 0.000000e+00 : f32
    %14 = vector.broadcast %cst_11 : f32 to vector<8x32xf32>
    %15 = arith.maximumf %13, %14 : vector<8x32xf32>
    %c0_12 = arith.constant 0 : index
    %c0_13 = arith.constant 0 : index
    %16 = vector.load %arg6[%c0_12, %c0_13] : memref<1x32xf32, #tpu.memory_space<vmem>>, vector<1x32xf32>
    %17 = tpu.transpose %15, [1, 0] : vector<8x32xf32> -> vector<32x8xf32>
    %cst_14 = arith.constant dense<0.000000e+00> : vector<1x8xf32>
    %18 = tpu.matmul %16, %17, %cst_14 {dimension_numbers = #tpu.dot_dimension_numbers<[1], [0], [0], [1], [0, 0, 1, 1], [], []>} : vector<1x32xf32>, vector<32x8xf32>, vector<1x8xf32> -> vector<1x8xf32>
    %c0_15 = arith.constant 0 : index
    %c0_16 = arith.constant 0 : index
    %19 = vector.load %arg7[%c0_15, %c0_16] : memref<1x1xf32, #tpu.memory_space<vmem>>, vector<1x1xf32>
    %20 = vector.broadcast %19 : vector<1x1xf32> to vector<1x8xf32>
    %21 = arith.addf %18, %20 : vector<1x8xf32>
    %22 = vector.shape_cast %21 : vector<1x8xf32> to vector<1x1x8xf32>
    %c0_17 = arith.constant 0 : index
    %c0_18 = arith.constant 0 : index
    %c0_19 = arith.constant 0 : index
    %23 = vector.load %arg8[%c0_17, %c0_18, %c0_19] : memref<1x1x8xf32, #tpu.memory_space<vmem>>, vector<1x1x8xf32>
    tpu.vector_store %arg8[%c0_17, %c0_18, %c0_19], %22 {strides = array<i32>} : memref<1x1x8xf32, #tpu.memory_space<vmem>>, vector<1x1x8xf32>,
    return
  }
  func.func @transform_0(%arg0: i32) -> (i32, i32) {
    %c0_i32 = arith.constant 0 : i32
    %c0_i32_0 = arith.constant 0 : i32
    return %arg0, %c0_i32 : i32, i32
  }
  func.func @transform_1(%arg0: i32) -> (i32, i32) {
    %c0_i32 = arith.constant 0 : i32
    %c0_i32_0 = arith.constant 0 : i32
    %c0_i32_1 = arith.constant 0 : i32
    return %c0_i32, %c0_i32_0 : i32, i32
  }
  func.func @transform_2(%arg0: i32) -> (i32, i32) {
    %c0_i32 = arith.constant 0 : i32
    %c0_i32_0 = arith.constant 0 : i32
    %c0_i32_1 = arith.constant 0 : i32
    return %c0_i32, %c0_i32_0 : i32, i32
  }
  func.func @transform_3(%arg0: i32) -> (i32, i32) {
    %c0_i32 = arith.constant 0 : i32
    %c0_i32_0 = arith.constant 0 : i32
    %c0_i32_1 = arith.constant 0 : i32
    return %c0_i32, %c0_i32_0 : i32, i32
  }
  func.func @transform_4(%arg0: i32) -> (i32, i32) {
    %c0_i32 = arith.constant 0 : i32
    %c0_i32_0 = arith.constant 0 : i32
    %c0_i32_1 = arith.constant 0 : i32
    return %c0_i32, %c0_i32_0 : i32, i32
  }
  func.func @transform_5(%arg0: i32) -> (i32, i32) {
    %c0_i32 = arith.constant 0 : i32
    %c0_i32_0 = arith.constant 0 : i32
    %c0_i32_1 = arith.constant 0 : i32
    return %c0_i32, %c0_i32_0 : i32, i32
  }
  func.func @transform_6(%arg0: i32) -> (i32, i32) {
    %c0_i32 = arith.constant 0 : i32
    %c0_i32_0 = arith.constant 0 : i32
    %c0_i32_1 = arith.constant 0 : i32
    return %c0_i32, %c0_i32_0 : i32, i32
  }
  func.func @transform_7(%arg0: i32) -> (i32, i32, i32) {
    %c0_i32 = arith.constant 0 : i32
    %c0_i32_0 = arith.constant 0 : i32
    %c0_i32_1 = arith.constant 0 : i32
    return %arg0, %c0_i32, %c0_i32_0 : i32, i32, i32
  }
}

</mosaic_0001>

<bundles_post_ra>
// kernel: tpu_custom_call.1
= control target key start
LH: loop header
LB: loop body
LE: loop exit
PB: predicated region body
PF: predicated region fallthrough
CT: control target
= control target key end

     0   :  { %s443_s0 = inlined_call_operand.vmem [shape: bf16[8,16], index: 0, kind: input, shape index: {}]   ;;  %s444_s1 = inlined_call_operand.vmem [shape: bf16[16,64], index: 1, kind: input, shape index: {}]   ;;  %s445_s2 = inlined_call_operand.vmem [shape: f32[1,64], index: 2, kind: input, shape index: {}]   ;;  %s446_s3 = inlined_call_operand.vmem [shape: bf16[64,32], index: 3, kind: input, shape index: {}]   ;;  %s447_s4 = inlined_call_operand.vmem [shape: f32[1,32], index: 4, kind: input, shape index: {}]   ;;  %s448_s5 = inlined_call_operand.vmem [shape: f32[1,32], index: 5, kind: input, shape index: {}]   ;;  %s449_s6 = inlined_call_operand.<no memory space> [shape: f32[1,1], index: 6, kind: input, shape index: {}]   ;;  %s450_s7 = inlined_call_operand.hbm [shape: f32[1,1,8], index: 7, kind: output, shape index: {}]  }
   0x1   :  { %v12_v0 = vstv %s449_s6 }
   0x2   :  { %13 = vst [vmem:[#allocation2] sm:$0x1] %v12_v0 }
   0x3   :  { %v328_v1 = vld [vmem:[%s444_s1] sm:$0xff]   ;;  %v357_v2 = vmov 0.0   ;;  %vm358_vm0 = vmmov 0   ;;  %vm46_vm1 = vcmask 130048   ;;  %v330_v5 = vld [vmem:[%s446_s3 + $0x8] sm:$0xff]  }
   0x4   :  { %300 = vmatprep.subr.bf16.mxu0 %v357_v2  ;;  %v30_v3 = vld [vmem:[%s443_s0] sm:$0xf]  ;;  %306 = vmatprep.subr.bf16.mxu1 %v357_v2 }
   0x5   :  { %301 = vmatpush3.bf16.msra.mxu0 %v328_v1  ;;  %302 = vmatprep.mubr.msk.bf16.mxu0 %vm358_vm0, %v357_v2  ;;  %v329_v4 = vld [vmem:[%s446_s3] sm:$0xff]  }
   0x6   :  { %314 = vmatprep.mubr.msk.bf16.mxu1 %vm358_vm0, %v357_v2  ;;  %318 = vmatprep.subr.mxu0 %v357_v2 }
   0x7   :  { %307 = vmatpush3.bf16.msra.mxu1 %v329_v4 }
   0x8   :  { %303 = vmatmul.mubr.msk.bf16.vlgmr.msra.gmra.mrb[0].mxu0 %vm46_vm1, %v30_v3  ;;  %308 = vmatprep.subr.bf16.mxu1 %v357_v2 }
   0x9   :  { %14 = vsyncpa [#allocation4], 0  ;;  %320 = vmatprep.mubr.msk.f32.mxu0 %vm358_vm0, %v357_v2  ;;  %v331_v6 = vld [vmem:[%s446_s3 + $0x10] sm:$0xff]   ;;  %v332_v7 = vld [vmem:[%s446_s3 + $0x18] sm:$0xff]   ;;  %vm131_vm2 = vcmask 523264   ;;  %v359_v17 = vmov 0   ;;  %v183_v26 = vlaneseq }
   0xa   :  { %v280_v8 = vld [vmem:[%s445_s2] ss:$0 sm:$0xff]  ;;  %327 = vset.pattern.permute.xlu0 %v359_v17  ;;  %vm187_vm3 = vcmask 261120   ;;  %s360_s16 = smov [#allocation3]   ;;  %vm264_vm4 = vcmask 57344  }
   0xb   :  { %309 = vmatpush3.bf16.msra.mxu1 %v330_v5  ;;  %v177_v16 = vld [vmem:[#allocation2] sm:$0x1]  ;;  %v184_v27 = vshrl.u32 %v183_v26, 7 }
   0xc   :  { %310 = vmatprep.subr.bf16.mxu1 %v357_v2  ;;  %180 = vperm.xlu0 %327, %v177_v16   ;;  %v283_v18 = vld [vmem:[%s447_s4] ss:$0 sm:$0xff]  ;;  %s272_s4 = sshll.u32 %s360_s16, 4  ;;  %s273_s4 = int_to_ptr.vmem [resolvable:$true] %s272_s4 }
   0xd   :  { %v176_v25 = vld [vmem:[%s448_s5] sm:$0x1]  ;;  %v185_v28 = vsub.s32 0, %v184_v27  ;;  %s333_s17 = scalar_lea.vmem %s273_s4, 16  ;;  %s337_s18 = scalar_lea.vmem %s273_s4, 32 }
   0xe   :  { %p334_p0 = scmp.ne.s32.totalorder %s273_s4, %s333_s17  ;;  %p338_p1 = scmp.lt.s32.totalorder %s273_s4, %s273_s4 }
   0xf   :  { %311 = vmatpush3.bf16.msra.mxu1 %v331_v6  ;;  %p339_p2 = scmp.lt.s32.totalorder %s337_s18, %s333_s17 }
  0x10   :  { %312 = vmatprep.subr.bf16.mxu1 %v357_v2 }
  0x11   :  { %p340_p3 = por %p339_p2, %p338_p1 }
  0x13   :  { %313 = vmatpush3.bf16.msra.mxu1 %v332_v7  ;;  %p341_p4 = pnand %p340_p3, %p334_p0 }
  0x8b   :  { %v181_v29 = vpop.permute.xlu0 %180 }
  0x8c   :  { %v186_v30 = vrot.slane %v181_v29, %v185_v28 }
  0xdb   :  { %v84_v9 = vpop.f32.mrb[0].mxu0 }
  0xdc   :  { %v85_v10 = vadd.f32 %v280_v8, %v84_v9  ;;  %v304_v11 = vpop.f32.mrb[1].mxu0 }
  0xdd   :  { %v87_v12 = vpop.f32.mrb[2].mxu0 }
  0xde   :  { %v90_v13 = vmax.f32 %v85_v10, 0.0  ;;  %v305_v14 = vpop.f32.mrb[3].mxu0 }
  0xe0   :  { %v91_v15 = vpack.c.bf16 %v90_v13, %v90_v13 }
  0xe2   :  { %315 = vmatmul.mubr.msk.bf16.vlgmr.msra.gmra.mrb[0].mxu1 %vm131_vm2, %v91_v15 }
 0x1b5   :  { %v169_v19 = vpop.f32.mrb[0].mxu1 }
 0x1b6   :  { %v170_v20 = vadd.f32 %v283_v18, %v169_v19  ;;  %v316_v21 = vpop.f32.mrb[1].mxu1 }
 0x1b7   :  { %v172_v22 = vpop.f32.mrb[2].mxu1 }
 0x1b8   :  { %v175_v23 = vmax.f32 %v170_v20, 0.0  ;;  %v317_v24 = vpop.f32.mrb[3].mxu1 }
 0x1ba   :  { %319 = vmatpush3.xpose.msk.msra.mxu0 %vm187_vm3, %v175_v23 }
 0x1bd   :  { %321 = vmatmul.mubr.msk.f32.vlgmr.msra.gmra.mrb[4].mxu0 %vm187_vm3, %v176_v25 }
 0x290   :  { %v260_v31 = vpop.f32.mrb[4].mxu0 }
 0x291   :  { %v261_v32 = vadd.f32 %v260_v31, %v186_v30  ;;  %v322_v33 = vpop.f32.mrb[5].mxu0 }
 0x293   :  { %265 = vst.msk [vmem:[#allocation3] sm:$0x1] %vm264_vm4, %v261_v32 }
 0x294   :  { %344 = shalt.err (!%p341_p4)
}
 0x295   :  { %s345_s20 = scalar_lea.hbm %s450_s7, 16 }
 0x296   :  { %p346_p5 = scmp.ne.s32.totalorder %s450_s7, %s345_s20  ;;  %p349_p6 = scmp.lt.u32.totalorder %s345_s20, %s450_s7 }
 0x298   :  { %p351_p7 = pnand %p349_p6, %p346_p5 }
 0x29a   :  { %354 = shalt.err (!%p351_p7)
}
 0x29b   :  { %275 = dma.vmem_to_hbm [thread:$0]  %s273_s4, 16, %s450_s7, [#allocation4]  }
 0x29c   :  { %355 = dma.done.wait [#allocation4], 16  }
 0x29d   :  { %356 = vsyncadd [#allocation4], 4294967280 }
 0x29e   :  { %279 = vsyncpa [#allocation4], 1 }

</bundles_post_ra>
